<compile_context>
chip_gen: v5e
topology: v5e:2x2
jax: 0.10.0
libtpu: 0.0.40
codegen_flags: <defaults>
</compile_context>

<pallas_src>
import functools

import jax
import jax.numpy as jnp
from jax import lax
from jax.experimental import pallas as pl
from jax.experimental.pallas import tpu as pltpu

_EPS = 1e-12  # matches torch.nn.functional.normalize default eps


def _sublane_multiple(dtype) -> int:
    # f32 -> 8, bf16 -> 16, int8/fp8 -> 32 (packed sublane counts).
    itemsize = jnp.dtype(dtype).itemsize
    return max(8, 32 // itemsize)


def _normalize_kernel(x_ref, o_ref, *, p: float):
    # One (tb, D) block per grid step; normalize each row along dim 1.
    xf = x_ref[...].astype(jnp.float32)

    if p == 2.0:
        # Fused rsqrt-multiply: sum-of-squares reduce -> rsqrt on (tb,1) column.
        sumsq = jnp.sum(xf * xf, axis=1, keepdims=True)
        inv = lax.rsqrt(jnp.maximum(sumsq, jnp.float32(_EPS * _EPS)))
    elif p == 1.0:
        s = jnp.sum(jnp.abs(xf), axis=1, keepdims=True)
        inv = 1.0 / jnp.maximum(s, jnp.float32(_EPS))
    elif float(p).is_integer() and p > 0.0 and int(p) % 2 == 0 and p <= 8.0:
        # Small even integer p: |x|^p = (x*x)^(p/2) via repeated multiplies
        # (avoids the exp/log pair of jnp.power on the full tile).
        x2 = xf * xf
        pw = x2
        for _ in range(int(p) // 2 - 1):
            pw = pw * x2
        s = jnp.sum(pw, axis=1, keepdims=True)
        norm = jnp.power(s, jnp.float32(1.0 / p))
        inv = 1.0 / jnp.maximum(norm, jnp.float32(_EPS))
    else:
        # TODO(synk): p in {inf, -inf, 0} (accepted by F.normalize) is not
        # handled by this general positive-p power path.
        s = jnp.sum(jnp.power(jnp.abs(xf), jnp.float32(p)), axis=1, keepdims=True)
        norm = jnp.power(s, jnp.float32(1.0 / p))
        inv = 1.0 / jnp.maximum(norm, jnp.float32(_EPS))

    o_ref[...] = (xf * inv).astype(o_ref.dtype)


def _normalize_2d(
    x: jax.Array,
    p: float,
    tile_rows: int | None = None,
    target_block_bytes: int = 2 << 20,
):
    """F.normalize(x, p=p, dim=1) for a 2-D (B, D) input — no host-side padding."""
    B, D = x.shape
    dtype = x.dtype
    itemsize = jnp.dtype(dtype).itemsize
    sub = _sublane_multiple(dtype)

    # Row tile: dtype-aware multiple of the sublane count, sized to roughly
    # `target_block_bytes` per block, capped at 1024 rows.  If the whole batch
    # fits in one block we use the full batch dim (block dim == array dim is
    # always layout-legal), so small inputs need no padding and no masking.
    bytes_per_row = max(1, D * itemsize)
    if tile_rows is None:
        tb = max(sub, min(1024, target_block_bytes // bytes_per_row))
        tb = max(sub, (tb // sub) * sub)
        if B <= tb:
            tb = B  # single full-extent block over the batch dim
    else:
        tb = tile_rows
        assert tb == B or tb % sub == 0, (
            f"tile_rows must equal the batch or be a multiple of {sub} for {dtype}"
        )

    grid_rows = pl.cdiv(B, tb)

    # VMEM budget: double-buffered in/out blocks plus f32 temporaries, using
    # the lane/sublane-padded block footprint; clamped so the same tiling is
    # safe on v5e (16 MiB scoped default) through v7x (64 MiB physical VMEM).
    rows_eff = ((tb + sub - 1) // sub) * sub
    lanes_eff = max(128, ((D + 127) // 128) * 128)
    block_bytes = rows_eff * lanes_eff * itemsize
    f32_block_bytes = rows_eff * lanes_eff * 4
    vmem_limit = int(
        min(32 << 20, max(4 << 20, 4 * block_bytes + 6 * f32_block_bytes + (1 << 20)))
    )

    kernel = functools.partial(_normalize_kernel, p=float(p))

    return pl.pallas_call(
        kernel,
        out_shape=jax.ShapeDtypeStruct((B, D), dtype),
        grid_spec=pltpu.PrefetchScalarGridSpec(
            num_scalar_prefetch=0,
            grid=(grid_rows,),
            in_specs=[pl.BlockSpec((tb, D), lambda i: (i, 0))],
            out_specs=pl.BlockSpec((tb, D), lambda i: (i, 0)),
        ),
        compiler_params=pltpu.CompilerParams(
            dimension_semantics=("parallel",),
            vmem_limit_bytes=vmem_limit,
        ),
    )(x)


def pallas_normalize(x: jax.Array, p: float = 2.0, **kwargs):
    """F.normalize(x, p=p, dim=1) for 2-D or N-D inputs (normalizes dim 1)."""
    if x.ndim == 2:
        return _normalize_2d(x, p, **kwargs)
    assert x.ndim >= 2, "pallas_normalize requires at least 2 dims (dim=1 norm)"
    # N-D: move the channel dim last, flatten to (rows, C), normalize rows,
    # then restore the original layout.  The transposes are wrapper-side XLA
    # ops; the adapter's primary use is 2-D (batch, embedding) tensors.
    C = x.shape[1]
    xt = jnp.moveaxis(x, 1, -1)
    tshape = xt.shape
    out2 = _normalize_2d(xt.reshape(-1, C), p, **kwargs)
    return jnp.moveaxis(out2.reshape(tshape), -1, 1)


def _ref_normalize(x, p):
    xf = x.astype(jnp.float32)
    if p == 2.0:
        norm = jnp.sqrt(jnp.sum(xf * xf, axis=1, keepdims=True))
    else:
        norm = jnp.sum(jnp.abs(xf) ** p, axis=1, keepdims=True) ** (1.0 / p)
    return (xf / jnp.maximum(norm, _EPS)).astype(x.dtype)


if __name__ == "__main__":
    key = jax.random.PRNGKey(0)

    # Shapes implied by the module (batch of embedding vectors).
    B, D = 8, 32
    x = jax.random.normal(key, (B, D), dtype=jnp.float32)

    out = jax.block_until_ready(pallas_normalize(x, p=2.0))
    assert out.shape == x.shape and out.dtype == x.dtype
    assert jnp.allclose(out, _ref_normalize(x, 2.0), atol=1e-6, rtol=1e-6)

    # Non-multiple-of-(8,128) shape: full-extent blocks, no padding needed.
    x2 = jax.random.normal(jax.random.PRNGKey(1), (37, 200), dtype=jnp.float32)
    out2 = jax.block_until_ready(pallas_normalize(x2, p=2.0))
    assert jnp.allclose(out2, _ref_normalize(x2, 2.0), atol=1e-6, rtol=1e-6)

    # p = 1 path.
    out3 = jax.block_until_ready(pallas_normalize(x2, p=1.0))
    assert jnp.allclose(out3, _ref_normalize(x2, 1.0), atol=1e-6, rtol=1e-6)

    # Multi-block path (batch tiled over the grid with a partial last block).
    x4 = jax.random.normal(jax.random.PRNGKey(2), (300, 64), dtype=jnp.float32)
    out4 = jax.block_until_ready(pallas_normalize(x4, p=2.0, tile_rows=128))
    assert jnp.allclose(out4, _ref_normalize(x4, 2.0), atol=1e-6, rtol=1e-6)

    # N-D input (dim=1 normalization through the wrapper reshape path).
    x5 = jax.random.normal(jax.random.PRNGKey(3), (2, 4, 6), dtype=jnp.float32)
    out5 = jax.block_until_ready(pallas_normalize(x5, p=2.0))
    assert jnp.allclose(out5, _ref_normalize(x5, 2.0), atol=1e-6, rtol=1e-6)

    print("KERNEL_OK")
</pallas_src>

<mosaic_0001>
module attributes {stable_mosaic.version = 11 : i64} {
  func.func @_normalize_kernel(%arg0: i32, %arg1: memref<8x32xf32, #tpu.memory_space<vmem>>, %arg2: memref<8x32xf32, #tpu.memory_space<vmem>>) attributes {dimension_semantics = [#tpu.dimension_semantics<parallel>], iteration_bounds = array<i64: 1>, scalar_prefetch = 0 : i64, scratch_operands = 0 : i64, tpu.core_type = #tpu.core_type<tc>, window_params = [{transform_indices = @transform_0, window_bounds = array<i64: 8, 32>}, {transform_indices = @transform_1, window_bounds = array<i64: 8, 32>}]} {
    %c0 = arith.constant 0 : index
    %c0_0 = arith.constant 0 : index
    %0 = vector.load %arg1[%c0, %c0_0] : memref<8x32xf32, #tpu.memory_space<vmem>>, vector<8x32xf32>
    %1 = arith.mulf %0, %0 : vector<8x32xf32>
    %cst = arith.constant dense<0.000000e+00> : vector<8xf32>
    %2 = vector.multi_reduction <add>, %1, %cst [1] : vector<8x32xf32> to vector<8xf32>
    %3 = vector.shape_cast %2 : vector<8xf32> to vector<8x1xf32>
    %cst_1 = arith.constant 1.000000e-24 : f32
    %4 = vector.broadcast %cst_1 : f32 to vector<8x1xf32>
    %5 = arith.maximumf %3, %4 : vector<8x1xf32>
    %6 = math.rsqrt %5 : vector<8x1xf32>
    %7 = vector.broadcast %6 : vector<8x1xf32> to vector<8x32xf32>
    %8 = arith.mulf %0, %7 : vector<8x32xf32>
    %c0_2 = arith.constant 0 : index
    %c0_3 = arith.constant 0 : index
    %9 = vector.load %arg2[%c0_2, %c0_3] : memref<8x32xf32, #tpu.memory_space<vmem>>, vector<8x32xf32>
    tpu.vector_store %arg2[%c0_2, %c0_3], %8 {strides = array<i32>} : memref<8x32xf32, #tpu.memory_space<vmem>>, vector<8x32xf32>,
    return
  }
  func.func @transform_0(%arg0: i32) -> (i32, i32) {
    %c0_i32 = arith.constant 0 : i32
    %c0_i32_0 = arith.constant 0 : i32
    return %arg0, %c0_i32 : i32, i32
  }
  func.func @transform_1(%arg0: i32) -> (i32, i32) {
    %c0_i32 = arith.constant 0 : i32
    %c0_i32_0 = arith.constant 0 : i32
    return %arg0, %c0_i32 : i32, i32
  }
}

</mosaic_0001>

<bundles_post_ra>
// kernel: tpu_custom_call.1
= control target key start
LH: loop header
LB: loop body
LE: loop exit
PB: predicated region body
PF: predicated region fallthrough
CT: control target
= control target key end

     0   :  { %6 = vsyncpa [#allocation3], 0  ;;  %s135_s0 = inlined_call_operand.hbm [shape: f32[8,32], index: 0, kind: input, shape index: {}]   ;;  %s136_s1 = inlined_call_operand.hbm [shape: f32[8,32], index: 1, kind: output, shape index: {}]  }
   0x1   :  { %7 = vsyncpa [#allocation4], 0  ;;  %s13_s8 = sshll.u32 %s135_s0, 4  ;;  %s115_s9 = smov [#allocation2]   ;;  %s14_s8 = int_to_ptr.hbm [resolvable:$true] %s13_s8 }
   0x2   :  { %s15_s10 = sshll.u32 %s115_s9, 4  ;;  %s16_s10 = int_to_ptr.vmem [resolvable:$true] %s15_s10 }
   0x3   :  { %18 = dma.hbm_to_vmem [thread:$0]  %s14_s8, 128, %s16_s10, [#allocation3]  }
   0x4   :  { %111 = dma.done.wait [#allocation3], 128  }
   0x5   :  { %112 = vsyncadd [#allocation3], 4294967168  ;;  %v23_v0 = vld [vmem:[#allocation2] sm:$0xff]  ;;  %vm25_vm0 = vcmask 261120   ;;  %s116_s0 = smov [#allocation5]   ;;  %s49_s14 = sshll.u32 %s136_s1, 4  ;;  %s50_s14 = int_to_ptr.hbm [resolvable:$true] %s49_s14 }
   0x6   :  { %v24_v1 = vmul.f32 %v23_v0, %v23_v0  ;;  %s47_s11 = sshll.u32 %s116_s0, 4  ;;  %s48_s11 = int_to_ptr.vmem [resolvable:$true] %s47_s11 }
   0x8   :  { %v26_v2 = vsel %vm25_vm0, %v24_v1, 0.0 }
   0x9   :  { %27 = vadd.xlane.f32.xlu0 %v26_v2 }
  0x7c   :  { %v28_v3 = vpop.xlane.xlu0 %27 }
  0x7d   :  { %v29_v4 = vmax.f32 %v28_v3, 1e-24 }
  0x7f   :  { %61 = vrsqrt.f32 %v29_v4  ;;  %vm36_vm2 = vweird.f32 %v29_v4 }
  0x85   :  { %v62_v5 = vpop.eup %61 }
  0x86   :  { %v31_v6 = vmul.f32 %v62_v5, %v29_v4  ;;  %vm37_vm1 = vweird.f32 %v62_v5 }
  0x87   :  { %vm38_vm3 = vmor %vm36_vm2, %vm37_vm1 }
  0x88   :  { %v32_v7 = vmul.f32 %v62_v5, %v31_v6 }
  0x8a   :  { %v33_v8 = vmul.f32 0.5, %v32_v7 }
  0x8c   :  { %v34_v9 = vsub.f32 1.5, %v33_v8 }
  0x8e   :  { %v35_v10 = vmul.f32 %v62_v5, %v34_v9 }
  0x90   :  { %v39_v11 = vsel %vm38_vm3, %v62_v5, %v35_v10 }
  0x91   :  { %v40_v12 = vmul.f32 %v39_v11, %v23_v0 }
  0x93   :  { %41 = vst.msk [vmem:[#allocation5] sm:$0xff] %vm25_vm0, %v40_v12 }
  0x94   :  { %52 = dma.vmem_to_hbm [thread:$0]  %s48_s11, 128, %s50_s14, [#allocation4]  }
  0x95   :  { %113 = dma.done.wait [#allocation4], 128  }
  0x96   :  { %114 = vsyncadd [#allocation4], 4294967168 }
  0x97   :  { %57 = vsyncpa [#allocation3], 1 }
  0x98   :  { %58 = vsyncpa [#allocation4], 1 }

</bundles_post_ra>
